<compile_context>
chip_gen: v6e
topology: v6e:2x2x1
jax: 0.10.0
libtpu: 0.0.40
codegen_flags: <defaults>
</compile_context>

<pallas_src>
import functools

import jax
import jax.numpy as jnp
from jax.experimental import pallas as pl
from jax.experimental.pallas import tpu as pltpu

_LANES = 128
# packed-output lane assignment (raw sums)
_TASK, _YSUM, _VAR, _DIFF = 0, 1, 2, 3


def _f32(x):
    return x if x.dtype == jnp.float32 else x.astype(jnp.float32)


def _sum11(x):
    """Full sum of a 2-D array -> (1, 1) f32."""
    return jnp.sum(jnp.sum(x, axis=1, keepdims=True), axis=0, keepdims=True)


def _round_up(x, m):
    return ((x + m - 1) // m) * m


def _pack_row0(values_by_lane):
    """Place (1,1) scalars into row 0 / given lanes of a single (8, 128) slab."""
    lane = jax.lax.broadcasted_iota(jnp.int32, (8, _LANES), 1)
    srow = jax.lax.broadcasted_iota(jnp.int32, (8, _LANES), 0)
    packed = jnp.zeros((8, _LANES), jnp.float32)
    for idx, val in values_by_lane.items():
        packed = packed + jnp.where((srow == 0) & (lane == idx), val, 0.0)
    return packed


def _detect_num_tensorcores():
    """Best-effort TensorCores-per-chip detection; falls back to 1 (correct on v5e/v6e)."""
    try:
        info = pltpu.get_tpu_info()
    except Exception:
        return 1
    for attr in ("num_tensorcores", "tensorcores_per_chip", "num_cores_per_chip",
                 "num_cores"):
        v = getattr(info, attr, None)
        try:
            v = int(v)
        except (TypeError, ValueError):
            continue
        if v >= 1:
            return min(v, 2)     # cap at 2 (max TCs per chip today)
    return 1


# --------------------------------------------------------------------------- #
# Kernels
# --------------------------------------------------------------------------- #
def _loss_kernel_sig(pred_ref, targ_ref, sig_ref, out_ref,
                     task_acc, ysum_acc, var_acc, diff_acc, *,
                     batch, tb, steps_per_core, n_levels):
    b = pl.program_id(1)
    last = pl.num_programs(1) - 1

    @pl.when(b == 0)
    def _init():
        task_acc[...] = jnp.zeros_like(task_acc)
        ysum_acc[...] = jnp.zeros_like(ysum_acc)
        var_acc[...] = jnp.zeros_like(var_acc)
        diff_acc[...] = jnp.zeros_like(diff_acc)

    # Logical (unclamped) tile index -> row mask.  Edge/phantom tile rows with
    # row >= batch are undefined garbage; jnp.where (a select, not a multiply)
    # forces their contribution to exactly zero everywhere below.
    tile = pl.program_id(0) * steps_per_core + b
    row = tile * tb + jax.lax.broadcasted_iota(jnp.int32, (tb, 1), 0)
    valid = row < batch                                      # (tb, 1)

    # --- task loss (MSE) raw partial sum ---------------------------------
    d = jnp.where(valid, _f32(pred_ref[...]) - _f32(targ_ref[...]), 0.0)
    task_acc[...] += _sum11(d * d)

    # --- fused single pass over the recursion axis S ----------------------
    # Work with y = sig - 0.5 (shift-invariant for var & diff; structure loss
    # becomes |sum(y)| / N), which avoids cancellation for sigmoid signatures.
    S = n_levels
    y = jnp.where(valid, _f32(sig_ref[0]) - 0.5, 0.0)        # (tb, Dsig)
    y_sum = y
    sq_part = _sum11(y * y)
    diff_part = jnp.zeros((1, 1), jnp.float32)
    prev = y
    for s in range(1, S):                                    # S is small & static
        y = jnp.where(valid, _f32(sig_ref[s]) - 0.5, 0.0)
        y_sum = y_sum + y
        sq_part = sq_part + _sum11(y * y)
        dd = y - prev
        diff_part = diff_part + _sum11(dd * dd)
        prev = y

    ysum_acc[...] += _sum11(y_sum)
    if S > 1:
        # unbiased-variance numerator: sum_s y^2 - (sum_s y)^2 / S
        var_acc[...] += sq_part - _sum11(y_sum * y_sum) * (1.0 / S)
        diff_acc[...] += diff_part

    @pl.when(b == last)
    def _finalize():
        out_ref[...] = _pack_row0({_TASK: task_acc[...],
                                   _YSUM: ysum_acc[...],
                                   _VAR: var_acc[...],
                                   _DIFF: diff_acc[...]}).reshape(1, 8, _LANES)


def _loss_kernel_nosig(pred_ref, targ_ref, out_ref, task_acc, *,
                       batch, tb, steps_per_core):
    b = pl.program_id(1)
    last = pl.num_programs(1) - 1

    @pl.when(b == 0)
    def _init():
        task_acc[...] = jnp.zeros_like(task_acc)

    tile = pl.program_id(0) * steps_per_core + b
    row = tile * tb + jax.lax.broadcasted_iota(jnp.int32, (tb, 1), 0)
    valid = row < batch

    d = jnp.where(valid, _f32(pred_ref[...]) - _f32(targ_ref[...]), 0.0)
    task_acc[...] += _sum11(d * d)

    @pl.when(b == last)
    def _finalize():
        out_ref[...] = _pack_row0({_TASK: task_acc[...]}).reshape(1, 8, _LANES)


# --------------------------------------------------------------------------- #
# Wrapper
# --------------------------------------------------------------------------- #
def recursive_structure_loss(outputs, targets, task_type='regression',
                             task_weight=1.0, structure_weight=0.1,
                             smoothness_weight=0.05, diversity_weight=0.02,
                             complexity_weight=0.01,
                             block_rows=1024, vmem_buffer_budget_bytes=6 << 20,
                             num_cores=None):
    """JAX/Pallas equivalent of RecursiveStructureLoss.forward (regression path)."""
    del complexity_weight  # unused in the PyTorch forward as well
    if task_type != 'regression':
        # TODO(synk): classification path (F.cross_entropy) not implemented.
        raise NotImplementedError("only task_type='regression' is supported")

    predictions = outputs['output']
    B = int(predictions.shape[0])
    pred2 = predictions.reshape(B, -1)
    targ2 = jnp.asarray(targets).reshape(B, -1)
    D = int(pred2.shape[1])

    sigs = outputs.get('recursive_signatures', None)
    if sigs is None:
        has_sig, sig = False, None
    elif isinstance(sigs, (list, tuple)):
        has_sig = len(sigs) > 0
        # axis-0 stack: plain concatenation, keeps (tb, Dsig) as the tiled dims.
        sig = jnp.stack(sigs, axis=0) if has_sig else None          # (S, B, Dsig)
    else:
        sig = jnp.asarray(sigs)                                      # assume (B, S, Dsig)
        has_sig = sig.size > 0
        sig = jnp.transpose(sig, (1, 0, 2)) if has_sig else None    # -> (S, B, Dsig)

    if has_sig:
        S, Dsig = int(sig.shape[0]), int(sig.shape[2])
    else:
        S = Dsig = 0

    # --- batch-tile sizing: padded VMEM footprint incl. x2 double-buffer -----
    lane_d = _round_up(max(D, 1), _LANES)
    lane_dsig = _round_up(Dsig, _LANES) if has_sig else 0
    row_bytes = 4 * (2 * lane_d + S * lane_dsig)        # padded bytes / batch row / buffer
    max_rows = max(8, vmem_buffer_budget_bytes // max(row_bytes, 1))
    tb = max(8, (min(block_rows, max_rows) // 8) * 8)
    tb = min(tb, _round_up(B, 8))
    nb = -(-B // tb)                                     # number of batch tiles

    cores = num_cores if num_cores is not None else _detect_num_tensorcores()
    cores = max(1, min(int(cores), nb))
    spc = -(-nb // cores)                                # tiles per core

    # double-buffered inputs + generous headroom, safe on v7x (64 MiB VMEM)
    vmem_limit = int(min(max(2 * tb * row_bytes + (8 << 20), 16 << 20), 48 << 20))
    cparams = pltpu.CompilerParams(
        dimension_semantics=("parallel", "arbitrary"),
        vmem_limit_bytes=vmem_limit)

    last_tile = nb - 1  # clamp so phantom tiles never generate OOB block indices

    def pt_map(c, b):
        return (jnp.minimum(c * spc + b, last_tile), 0)

    def sig_map(c, b):
        return (0, jnp.minimum(c * spc + b, last_tile), 0)

    def out_map(c, b):
        return (c, 0, 0)

    out_shape = jax.ShapeDtypeStruct((cores, 8, _LANES), jnp.float32)
    out_spec = pl.BlockSpec((1, 8, _LANES), out_map)
    pt_spec = pl.BlockSpec((tb, D), pt_map)

    if has_sig:
        kernel = functools.partial(_loss_kernel_sig, batch=B, tb=tb,
                                   steps_per_core=spc, n_levels=S)
        raw = pl.pallas_call(
            kernel,
            out_shape=out_shape,
            grid_spec=pltpu.PrefetchScalarGridSpec(
                num_scalar_prefetch=0, grid=(cores, spc),
                in_specs=[pt_spec, pt_spec,
                          pl.BlockSpec((S, tb, Dsig), sig_map)],
                out_specs=out_spec,
                scratch_shapes=[pltpu.VMEM((1, 1), jnp.float32)
                                for _ in range(4)]),
            compiler_params=cparams,
        )(pred2, targ2, sig)
    else:
        kernel = functools.partial(_loss_kernel_nosig, batch=B, tb=tb,
                                   steps_per_core=spc)
        raw = pl.pallas_call(
            kernel,
            out_shape=out_shape,
            grid_spec=pltpu.PrefetchScalarGridSpec(
                num_scalar_prefetch=0, grid=(cores, spc),
                in_specs=[pt_spec, pt_spec],
                out_specs=out_spec,
                scratch_shapes=[pltpu.VMEM((1, 1), jnp.float32)]),
            compiler_params=cparams,
        )(pred2, targ2)

    # Combine per-core raw partial sums, then normalize / abs / weight in JAX
    # (abs must be applied after summing the cores' partials).
    sums = jnp.sum(raw[:, 0, :], axis=0)                       # (128,)

    task_loss = sums[_TASK] / float(B * D)
    total = task_weight * task_loss
    comps = {'task_loss': task_loss}
    if has_sig:
        if S > 1:
            diversity = -(sums[_VAR] / float((S - 1) * B * Dsig))
            total = total + diversity_weight * diversity
            comps['diversity_loss'] = diversity
            smoothness = sums[_DIFF] / float(B * (S - 1) * Dsig)
            total = total + smoothness_weight * smoothness
            comps['smoothness_loss'] = smoothness
        # mean(sig) - 0.5 == mean(sig - 0.5) == sum(y)/N
        structure = jnp.abs(sums[_YSUM]) / float(B * S * Dsig)
        total = total + structure_weight * structure
        comps['structure_loss'] = structure
    comps['total_loss'] = total
    return comps


# --------------------------------------------------------------------------- #
# Self-test
# --------------------------------------------------------------------------- #
if __name__ == "__main__":
    key = jax.random.PRNGKey(0)
    k1, k2, ks1, ks2, ks3, ks4 = jax.random.split(key, 6)

    # --- test 1: small shapes, single grid step ---------------------------
    B, D, S, Dsig = 8, 32, 4, 16
    predictions = jax.random.normal(k1, (B, D), jnp.float32)
    targets = jax.random.normal(k2, (B, D), jnp.float32)
    signatures = [jax.nn.sigmoid(jax.random.normal(k, (B, Dsig), jnp.float32))
                  for k in (ks1, ks2, ks3, ks4)]

    # Plain-JAX reference (mirrors the PyTorch forward).
    def ref_losses(pred, targ, sig_list):
        sig = jnp.stack(sig_list, axis=1)
        task = jnp.mean((pred - targ) ** 2)
        div = -jnp.mean(jnp.var(sig, axis=1, ddof=1))
        smooth = jnp.mean(jnp.diff(sig, axis=1) ** 2)
        struct = jnp.abs(jnp.mean(sig) - 0.5)
        total = 1.0 * task + 0.02 * div + 0.05 * smooth + 0.1 * struct
        return task, div, smooth, struct, total

    outputs = {'output': predictions, 'recursive_signatures': signatures}
    losses = recursive_structure_loss(outputs, targets)
    jax.block_until_ready(losses)
    r = ref_losses(predictions, targets, signatures)
    assert jnp.allclose(losses['task_loss'], r[0], atol=1e-5)
    assert jnp.allclose(losses['diversity_loss'], r[1], atol=1e-5)
    assert jnp.allclose(losses['smoothness_loss'], r[2], atol=1e-5)
    assert jnp.allclose(losses['structure_loss'], r[3], atol=1e-5)
    assert jnp.allclose(losses['total_loss'], r[4], atol=1e-5)

    # --- test 2: multi-tile grid with in-kernel remainder masking ----------
    kk = jax.random.split(jax.random.PRNGKey(1), 6)
    B2 = 20
    pred2 = jax.random.normal(kk[0], (B2, D), jnp.float32)
    targ2 = jax.random.normal(kk[1], (B2, D), jnp.float32)
    sigs2 = [jax.nn.sigmoid(jax.random.normal(k, (B2, Dsig), jnp.float32))
             for k in kk[2:]]
    losses2 = recursive_structure_loss(
        {'output': pred2, 'recursive_signatures': sigs2}, targ2, block_rows=8)
    jax.block_until_ready(losses2)
    r2 = ref_losses(pred2, targ2, sigs2)
    assert jnp.allclose(losses2['task_loss'], r2[0], atol=1e-5)
    assert jnp.allclose(losses2['diversity_loss'], r2[1], atol=1e-5)
    assert jnp.allclose(losses2['smoothness_loss'], r2[2], atol=1e-5)
    assert jnp.allclose(losses2['structure_loss'], r2[3], atol=1e-5)
    assert jnp.allclose(losses2['total_loss'], r2[4], atol=1e-5)

    # --- test 3: forced 2-way core split (parallel axis + phantom tile +
    #             wrapper-side combine); runs sequentially on 1-TC chips ----
    losses2c = recursive_structure_loss(
        {'output': pred2, 'recursive_signatures': sigs2}, targ2,
        block_rows=8, num_cores=2)
    jax.block_until_ready(losses2c)
    assert jnp.allclose(losses2c['task_loss'], r2[0], atol=1e-5)
    assert jnp.allclose(losses2c['diversity_loss'], r2[1], atol=1e-5)
    assert jnp.allclose(losses2c['smoothness_loss'], r2[2], atol=1e-5)
    assert jnp.allclose(losses2c['structure_loss'], r2[3], atol=1e-5)
    assert jnp.allclose(losses2c['total_loss'], r2[4], atol=1e-5)

    # --- test 4: no-signature path (separate kernel, no dummy DMA) ---------
    losses3 = recursive_structure_loss({'output': predictions}, targets)
    jax.block_until_ready(losses3)
    assert jnp.allclose(losses3['task_loss'], r[0], atol=1e-5)
    assert jnp.allclose(losses3['total_loss'], 1.0 * r[0], atol=1e-5)
    assert 'structure_loss' not in losses3

    print("KERNEL_OK")
</pallas_src>

<mosaic_0001>
module attributes {stable_mosaic.version = 11 : i64} {
  func.func @_loss_kernel_sig(%arg0: i32, %arg1: i32, %arg2: memref<8x32xf32, #tpu.memory_space<vmem>>, %arg3: memref<8x32xf32, #tpu.memory_space<vmem>>, %arg4: memref<4x8x16xf32, #tpu.memory_space<vmem>>, %arg5: memref<1x8x128xf32, #tpu.memory_space<vmem>>, %arg6: memref<1x1xf32, #tpu.memory_space<vmem>>, %arg7: memref<1x1xf32, #tpu.memory_space<vmem>>, %arg8: memref<1x1xf32, #tpu.memory_space<vmem>>, %arg9: memref<1x1xf32, #tpu.memory_space<vmem>>) attributes {dimension_semantics = [#tpu.dimension_semantics<parallel>, #tpu.dimension_semantics<arbitrary>], iteration_bounds = array<i64: 1, 1>, scalar_prefetch = 0 : i64, scratch_operands = 4 : i64, tpu.core_type = #tpu.core_type<tc>, window_params = [{transform_indices = @transform_0, window_bounds = array<i64: 8, 32>}, {transform_indices = @transform_1, window_bounds = array<i64: 8, 32>}, {transform_indices = @transform_2, window_bounds = array<i64: 4, 8, 16>}, {transform_indices = @transform_3, window_bounds = array<i64: 1, 8, 128>}]} {
    %c0_i32 = arith.constant 0 : i32
    %0 = arith.cmpi eq, %arg1, %c0_i32 : i32
    %1 = arith.extui %0 : i1 to i32
    %c0_i32_0 = arith.constant 0 : i32
    %2 = arith.cmpi ne, %1, %c0_i32_0 : i32
    scf.if %2 {
      %cst_62 = arith.constant 0.000000e+00 : f32
      %130 = vector.broadcast %cst_62 : f32 to vector<1x1xf32>
      %c0_63 = arith.constant 0 : index
      %c0_64 = arith.constant 0 : index
      %131 = vector.load %arg6[%c0_63, %c0_64] : memref<1x1xf32, #tpu.memory_space<vmem>>, vector<1x1xf32>
      tpu.vector_store %arg6[%c0_63, %c0_64], %130 {strides = array<i32>} : memref<1x1xf32, #tpu.memory_space<vmem>>, vector<1x1xf32>,
      %cst_65 = arith.constant 0.000000e+00 : f32
      %132 = vector.broadcast %cst_65 : f32 to vector<1x1xf32>
      %c0_66 = arith.constant 0 : index
      %c0_67 = arith.constant 0 : index
      %133 = vector.load %arg7[%c0_66, %c0_67] : memref<1x1xf32, #tpu.memory_space<vmem>>, vector<1x1xf32>
      tpu.vector_store %arg7[%c0_66, %c0_67], %132 {strides = array<i32>} : memref<1x1xf32, #tpu.memory_space<vmem>>, vector<1x1xf32>,
      %cst_68 = arith.constant 0.000000e+00 : f32
      %134 = vector.broadcast %cst_68 : f32 to vector<1x1xf32>
      %c0_69 = arith.constant 0 : index
      %c0_70 = arith.constant 0 : index
      %135 = vector.load %arg8[%c0_69, %c0_70] : memref<1x1xf32, #tpu.memory_space<vmem>>, vector<1x1xf32>
      tpu.vector_store %arg8[%c0_69, %c0_70], %134 {strides = array<i32>} : memref<1x1xf32, #tpu.memory_space<vmem>>, vector<1x1xf32>,
      %cst_71 = arith.constant 0.000000e+00 : f32
      %136 = vector.broadcast %cst_71 : f32 to vector<1x1xf32>
      %c0_72 = arith.constant 0 : index
      %c0_73 = arith.constant 0 : index
      %137 = vector.load %arg9[%c0_72, %c0_73] : memref<1x1xf32, #tpu.memory_space<vmem>>, vector<1x1xf32>
      tpu.vector_store %arg9[%c0_72, %c0_73], %136 {strides = array<i32>} : memref<1x1xf32, #tpu.memory_space<vmem>>, vector<1x1xf32>,
    } else {
    }
    %c1_i32 = arith.constant 1 : i32
    %3 = arith.muli %arg0, %c1_i32 : i32
    %4 = arith.addi %3, %arg1 : i32
    %c8_i32 = arith.constant 8 : i32
    %5 = arith.muli %4, %c8_i32 : i32
    %6 = tpu.iota {dimensions = array<i32: 0>} : vector<8x1xi32>
    %7 = vector.broadcast %5 : i32 to vector<8x1xi32>
    %8 = arith.addi %7, %6 : vector<8x1xi32>
    %c8_i32_1 = arith.constant 8 : i32
    %9 = vector.broadcast %c8_i32_1 : i32 to vector<8x1xi32>
    %10 = arith.cmpi slt, %8, %9 : vector<8x1xi32>
    %c0 = arith.constant 0 : index
    %c0_2 = arith.constant 0 : index
    %11 = vector.load %arg2[%c0, %c0_2] : memref<8x32xf32, #tpu.memory_space<vmem>>, vector<8x32xf32>
    %c0_3 = arith.constant 0 : index
    %c0_4 = arith.constant 0 : index
    %12 = vector.load %arg3[%c0_3, %c0_4] : memref<8x32xf32, #tpu.memory_space<vmem>>, vector<8x32xf32>
    %13 = arith.subf %11, %12 : vector<8x32xf32>
    %cst = arith.constant 0.000000e+00 : f32
    %14 = vector.shape_cast %10 : vector<8x1xi1> to vector<8x1xi1>
    %15 = vector.broadcast %14 : vector<8x1xi1> to vector<8x32xi1>
    %16 = vector.broadcast %cst : f32 to vector<8x32xf32>
    %17 = arith.select %15, %13, %16 : vector<8x32xi1>, vector<8x32xf32>
    %c0_5 = arith.constant 0 : index
    %c0_6 = arith.constant 0 : index
    %18 = vector.load %arg6[%c0_5, %c0_6] : memref<1x1xf32, #tpu.memory_space<vmem>>, vector<1x1xf32>
    %19 = arith.mulf %17, %17 : vector<8x32xf32>
    %cst_7 = arith.constant dense<0.000000e+00> : vector<8xf32>
    %20 = vector.multi_reduction <add>, %19, %cst_7 [1] : vector<8x32xf32> to vector<8xf32>
    %21 = vector.shape_cast %20 : vector<8xf32> to vector<8x1xf32>
    %cst_8 = arith.constant dense<0.000000e+00> : vector<1xf32>
    %22 = vector.multi_reduction <add>, %21, %cst_8 [0] : vector<8x1xf32> to vector<1xf32>
    %23 = vector.shape_cast %22 : vector<1xf32> to vector<1x1xf32>
    %24 = arith.addf %18, %23 : vector<1x1xf32>
    %c0_9 = arith.constant 0 : index
    %c0_10 = arith.constant 0 : index
    %25 = vector.load %arg6[%c0_9, %c0_10] : memref<1x1xf32, #tpu.memory_space<vmem>>, vector<1x1xf32>
    tpu.vector_store %arg6[%c0_9, %c0_10], %24 {strides = array<i32>} : memref<1x1xf32, #tpu.memory_space<vmem>>, vector<1x1xf32>,
    %c0_11 = arith.constant 0 : index
    %c0_12 = arith.constant 0 : index
    %c0_13 = arith.constant 0 : index
    %26 = vector.load %arg4[%c0_11, %c0_12, %c0_13] : memref<4x8x16xf32, #tpu.memory_space<vmem>>, vector<1x8x16xf32>
    %27 = vector.shape_cast %26 : vector<1x8x16xf32> to vector<8x16xf32>
    %cst_14 = arith.constant 5.000000e-01 : f32
    %28 = vector.broadcast %cst_14 : f32 to vector<8x16xf32>
    %29 = arith.subf %27, %28 : vector<8x16xf32>
    %cst_15 = arith.constant 0.000000e+00 : f32
    %30 = vector.shape_cast %10 : vector<8x1xi1> to vector<8x1xi1>
    %31 = vector.broadcast %30 : vector<8x1xi1> to vector<8x16xi1>
    %32 = vector.broadcast %cst_15 : f32 to vector<8x16xf32>
    %33 = arith.select %31, %29, %32 : vector<8x16xi1>, vector<8x16xf32>
    %34 = arith.mulf %33, %33 : vector<8x16xf32>
    %cst_16 = arith.constant dense<0.000000e+00> : vector<8xf32>
    %35 = vector.multi_reduction <add>, %34, %cst_16 [1] : vector<8x16xf32> to vector<8xf32>
    %36 = vector.shape_cast %35 : vector<8xf32> to vector<8x1xf32>
    %cst_17 = arith.constant dense<0.000000e+00> : vector<1xf32>
    %37 = vector.multi_reduction <add>, %36, %cst_17 [0] : vector<8x1xf32> to vector<1xf32>
    %38 = vector.shape_cast %37 : vector<1xf32> to vector<1x1xf32>
    %cst_18 = arith.constant 0.000000e+00 : f32
    %39 = vector.broadcast %cst_18 : f32 to vector<1x1xf32>
    %c1 = arith.constant 1 : index
    %c0_19 = arith.constant 0 : index
    %c0_20 = arith.constant 0 : index
    %40 = vector.load %arg4[%c1, %c0_19, %c0_20] : memref<4x8x16xf32, #tpu.memory_space<vmem>>, vector<1x8x16xf32>
    %41 = vector.shape_cast %40 : vector<1x8x16xf32> to vector<8x16xf32>
    %cst_21 = arith.constant 5.000000e-01 : f32
    %42 = vector.broadcast %cst_21 : f32 to vector<8x16xf32>
    %43 = arith.subf %41, %42 : vector<8x16xf32>
    %cst_22 = arith.constant 0.000000e+00 : f32
    %44 = vector.shape_cast %10 : vector<8x1xi1> to vector<8x1xi1>
    %45 = vector.broadcast %44 : vector<8x1xi1> to vector<8x16xi1>
    %46 = vector.broadcast %cst_22 : f32 to vector<8x16xf32>
    %47 = arith.select %45, %43, %46 : vector<8x16xi1>, vector<8x16xf32>
    %48 = arith.addf %33, %47 : vector<8x16xf32>
    %49 = arith.mulf %47, %47 : vector<8x16xf32>
    %cst_23 = arith.constant dense<0.000000e+00> : vector<8xf32>
    %50 = vector.multi_reduction <add>, %49, %cst_23 [1] : vector<8x16xf32> to vector<8xf32>
    %51 = vector.shape_cast %50 : vector<8xf32> to vector<8x1xf32>
    %cst_24 = arith.constant dense<0.000000e+00> : vector<1xf32>
    %52 = vector.multi_reduction <add>, %51, %cst_24 [0] : vector<8x1xf32> to vector<1xf32>
    %53 = vector.shape_cast %52 : vector<1xf32> to vector<1x1xf32>
    %54 = arith.addf %38, %53 : vector<1x1xf32>
    %55 = arith.subf %47, %33 : vector<8x16xf32>
    %56 = arith.mulf %55, %55 : vector<8x16xf32>
    %cst_25 = arith.constant dense<0.000000e+00> : vector<8xf32>
    %57 = vector.multi_reduction <add>, %56, %cst_25 [1] : vector<8x16xf32> to vector<8xf32>
    %58 = vector.shape_cast %57 : vector<8xf32> to vector<8x1xf32>
    %cst_26 = arith.constant dense<0.000000e+00> : vector<1xf32>
    %59 = vector.multi_reduction <add>, %58, %cst_26 [0] : vector<8x1xf32> to vector<1xf32>
    %60 = vector.shape_cast %59 : vector<1xf32> to vector<1x1xf32>
    %61 = arith.addf %39, %60 : vector<1x1xf32>
    %c2 = arith.constant 2 : index
    %c0_27 = arith.constant 0 : index
    %c0_28 = arith.constant 0 : index
    %62 = vector.load %arg4[%c2, %c0_27, %c0_28] : memref<4x8x16xf32, #tpu.memory_space<vmem>>, vector<1x8x16xf32>
    %63 = vector.shape_cast %62 : vector<1x8x16xf32> to vector<8x16xf32>
    %cst_29 = arith.constant 5.000000e-01 : f32
    %64 = vector.broadcast %cst_29 : f32 to vector<8x16xf32>
    %65 = arith.subf %63, %64 : vector<8x16xf32>
    %cst_30 = arith.constant 0.000000e+00 : f32
    %66 = vector.shape_cast %10 : vector<8x1xi1> to vector<8x1xi1>
    %67 = vector.broadcast %66 : vector<8x1xi1> to vector<8x16xi1>
    %68 = vector.broadcast %cst_30 : f32 to vector<8x16xf32>
    %69 = arith.select %67, %65, %68 : vector<8x16xi1>, vector<8x16xf32>
    %70 = arith.addf %48, %69 : vector<8x16xf32>
    %71 = arith.mulf %69, %69 : vector<8x16xf32>
    %cst_31 = arith.constant dense<0.000000e+00> : vector<8xf32>
    %72 = vector.multi_reduction <add>, %71, %cst_31 [1] : vector<8x16xf32> to vector<8xf32>
    %73 = vector.shape_cast %72 : vector<8xf32> to vector<8x1xf32>
    %cst_32 = arith.constant dense<0.000000e+00> : vector<1xf32>
    %74 = vector.multi_reduction <add>, %73, %cst_32 [0] : vector<8x1xf32> to vector<1xf32>
    %75 = vector.shape_cast %74 : vector<1xf32> to vector<1x1xf32>
    %76 = arith.addf %54, %75 : vector<1x1xf32>
    %77 = arith.subf %69, %47 : vector<8x16xf32>
    %78 = arith.mulf %77, %77 : vector<8x16xf32>
    %cst_33 = arith.constant dense<0.000000e+00> : vector<8xf32>
    %79 = vector.multi_reduction <add>, %78, %cst_33 [1] : vector<8x16xf32> to vector<8xf32>
    %80 = vector.shape_cast %79 : vector<8xf32> to vector<8x1xf32>
    %cst_34 = arith.constant dense<0.000000e+00> : vector<1xf32>
    %81 = vector.multi_reduction <add>, %80, %cst_34 [0] : vector<8x1xf32> to vector<1xf32>
    %82 = vector.shape_cast %81 : vector<1xf32> to vector<1x1xf32>
    %83 = arith.addf %61, %82 : vector<1x1xf32>
    %c3 = arith.constant 3 : index
    %c0_35 = arith.constant 0 : index
    %c0_36 = arith.constant 0 : index
    %84 = vector.load %arg4[%c3, %c0_35, %c0_36] : memref<4x8x16xf32, #tpu.memory_space<vmem>>, vector<1x8x16xf32>
    %85 = vector.shape_cast %84 : vector<1x8x16xf32> to vector<8x16xf32>
    %cst_37 = arith.constant 5.000000e-01 : f32
    %86 = vector.broadcast %cst_37 : f32 to vector<8x16xf32>
    %87 = arith.subf %85, %86 : vector<8x16xf32>
    %cst_38 = arith.constant 0.000000e+00 : f32
    %88 = vector.shape_cast %10 : vector<8x1xi1> to vector<8x1xi1>
    %89 = vector.broadcast %88 : vector<8x1xi1> to vector<8x16xi1>
    %90 = vector.broadcast %cst_38 : f32 to vector<8x16xf32>
    %91 = arith.select %89, %87, %90 : vector<8x16xi1>, vector<8x16xf32>
    %92 = arith.addf %70, %91 : vector<8x16xf32>
    %93 = arith.mulf %91, %91 : vector<8x16xf32>
    %cst_39 = arith.constant dense<0.000000e+00> : vector<8xf32>
    %94 = vector.multi_reduction <add>, %93, %cst_39 [1] : vector<8x16xf32> to vector<8xf32>
    %95 = vector.shape_cast %94 : vector<8xf32> to vector<8x1xf32>
    %cst_40 = arith.constant dense<0.000000e+00> : vector<1xf32>
    %96 = vector.multi_reduction <add>, %95, %cst_40 [0] : vector<8x1xf32> to vector<1xf32>
    %97 = vector.shape_cast %96 : vector<1xf32> to vector<1x1xf32>
    %98 = arith.addf %76, %97 : vector<1x1xf32>
    %99 = arith.subf %91, %69 : vector<8x16xf32>
    %100 = arith.mulf %99, %99 : vector<8x16xf32>
    %cst_41 = arith.constant dense<0.000000e+00> : vector<8xf32>
    %101 = vector.multi_reduction <add>, %100, %cst_41 [1] : vector<8x16xf32> to vector<8xf32>
    %102 = vector.shape_cast %101 : vector<8xf32> to vector<8x1xf32>
    %cst_42 = arith.constant dense<0.000000e+00> : vector<1xf32>
    %103 = vector.multi_reduction <add>, %102, %cst_42 [0] : vector<8x1xf32> to vector<1xf32>
    %104 = vector.shape_cast %103 : vector<1xf32> to vector<1x1xf32>
    %105 = arith.addf %83, %104 : vector<1x1xf32>
    %c0_43 = arith.constant 0 : index
    %c0_44 = arith.constant 0 : index
    %106 = vector.load %arg7[%c0_43, %c0_44] : memref<1x1xf32, #tpu.memory_space<vmem>>, vector<1x1xf32>
    %cst_45 = arith.constant dense<0.000000e+00> : vector<8xf32>
    %107 = vector.multi_reduction <add>, %92, %cst_45 [1] : vector<8x16xf32> to vector<8xf32>
    %108 = vector.shape_cast %107 : vector<8xf32> to vector<8x1xf32>
    %cst_46 = arith.constant dense<0.000000e+00> : vector<1xf32>
    %109 = vector.multi_reduction <add>, %108, %cst_46 [0] : vector<8x1xf32> to vector<1xf32>
    %110 = vector.shape_cast %109 : vector<1xf32> to vector<1x1xf32>
    %111 = arith.addf %106, %110 : vector<1x1xf32>
    %c0_47 = arith.constant 0 : index
    %c0_48 = arith.constant 0 : index
    %112 = vector.load %arg7[%c0_47, %c0_48] : memref<1x1xf32, #tpu.memory_space<vmem>>, vector<1x1xf32>
    tpu.vector_store %arg7[%c0_47, %c0_48], %111 {strides = array<i32>} : memref<1x1xf32, #tpu.memory_space<vmem>>, vector<1x1xf32>,
    %c0_49 = arith.constant 0 : index
    %c0_50 = arith.constant 0 : index
    %113 = vector.load %arg8[%c0_49, %c0_50] : memref<1x1xf32, #tpu.memory_space<vmem>>, vector<1x1xf32>
    %114 = arith.mulf %92, %92 : vector<8x16xf32>
    %cst_51 = arith.constant dense<0.000000e+00> : vector<8xf32>
    %115 = vector.multi_reduction <add>, %114, %cst_51 [1] : vector<8x16xf32> to vector<8xf32>
    %116 = vector.shape_cast %115 : vector<8xf32> to vector<8x1xf32>
    %cst_52 = arith.constant dense<0.000000e+00> : vector<1xf32>
    %117 = vector.multi_reduction <add>, %116, %cst_52 [0] : vector<8x1xf32> to vector<1xf32>
    %118 = vector.shape_cast %117 : vector<1xf32> to vector<1x1xf32>
    %cst_53 = arith.constant 2.500000e-01 : f32
    %119 = vector.broadcast %cst_53 : f32 to vector<1x1xf32>
    %120 = arith.mulf %118, %119 : vector<1x1xf32>
    %121 = arith.subf %98, %120 : vector<1x1xf32>
    %122 = arith.addf %113, %121 : vector<1x1xf32>
    %c0_54 = arith.constant 0 : index
    %c0_55 = arith.constant 0 : index
    %123 = vector.load %arg8[%c0_54, %c0_55] : memref<1x1xf32, #tpu.memory_space<vmem>>, vector<1x1xf32>
    tpu.vector_store %arg8[%c0_54, %c0_55], %122 {strides = array<i32>} : memref<1x1xf32, #tpu.memory_space<vmem>>, vector<1x1xf32>,
    %c0_56 = arith.constant 0 : index
    %c0_57 = arith.constant 0 : index
    %124 = vector.load %arg9[%c0_56, %c0_57] : memref<1x1xf32, #tpu.memory_space<vmem>>, vector<1x1xf32>
    %125 = arith.addf %124, %105 : vector<1x1xf32>
    %c0_58 = arith.constant 0 : index
    %c0_59 = arith.constant 0 : index
    %126 = vector.load %arg9[%c0_58, %c0_59] : memref<1x1xf32, #tpu.memory_space<vmem>>, vector<1x1xf32>
    tpu.vector_store %arg9[%c0_58, %c0_59], %125 {strides = array<i32>} : memref<1x1xf32, #tpu.memory_space<vmem>>, vector<1x1xf32>,
    %c0_i32_60 = arith.constant 0 : i32
    %127 = arith.cmpi eq, %arg1, %c0_i32_60 : i32
    %128 = arith.extui %127 : i1 to i32
    %c0_i32_61 = arith.constant 0 : i32
    %129 = arith.cmpi ne, %128, %c0_i32_61 : i32
    scf.if %129 {
      %c0_62 = arith.constant 0 : index
      %c0_63 = arith.constant 0 : index
      %130 = vector.load %arg6[%c0_62, %c0_63] : memref<1x1xf32, #tpu.memory_space<vmem>>, vector<1x1xf32>
      %c0_64 = arith.constant 0 : index
      %c0_65 = arith.constant 0 : index
      %131 = vector.load %arg7[%c0_64, %c0_65] : memref<1x1xf32, #tpu.memory_space<vmem>>, vector<1x1xf32>
      %c0_66 = arith.constant 0 : index
      %c0_67 = arith.constant 0 : index
      %132 = vector.load %arg8[%c0_66, %c0_67] : memref<1x1xf32, #tpu.memory_space<vmem>>, vector<1x1xf32>
      %c0_68 = arith.constant 0 : index
      %c0_69 = arith.constant 0 : index
      %133 = vector.load %arg9[%c0_68, %c0_69] : memref<1x1xf32, #tpu.memory_space<vmem>>, vector<1x1xf32>
      %134 = tpu.iota {dimensions = array<i32: 1>} : vector<8x128xi32>
      %135 = tpu.iota {dimensions = array<i32: 0>} : vector<8x128xi32>
      %cst_70 = arith.constant 0.000000e+00 : f32
      %136 = vector.broadcast %cst_70 : f32 to vector<8x128xf32>
      %c0_i32_71 = arith.constant 0 : i32
      %137 = vector.broadcast %c0_i32_71 : i32 to vector<8x128xi32>
      %138 = arith.cmpi eq, %135, %137 : vector<8x128xi32>
      %c0_i32_72 = arith.constant 0 : i32
      %139 = vector.broadcast %c0_i32_72 : i32 to vector<8x128xi32>
      %140 = arith.cmpi eq, %134, %139 : vector<8x128xi32>
      %141 = arith.andi %138, %140 : vector<8x128xi1>
      %cst_73 = arith.constant 0.000000e+00 : f32
      %142 = vector.shape_cast %130 : vector<1x1xf32> to vector<1x1xf32>
      %143 = vector.broadcast %142 : vector<1x1xf32> to vector<8x128xf32>
      %144 = vector.broadcast %cst_73 : f32 to vector<8x128xf32>
      %145 = arith.select %141, %143, %144 : vector<8x128xi1>, vector<8x128xf32>
      %146 = arith.addf %136, %145 : vector<8x128xf32>
      %c0_i32_74 = arith.constant 0 : i32
      %147 = vector.broadcast %c0_i32_74 : i32 to vector<8x128xi32>
      %148 = arith.cmpi eq, %135, %147 : vector<8x128xi32>
      %c1_i32_75 = arith.constant 1 : i32
      %149 = vector.broadcast %c1_i32_75 : i32 to vector<8x128xi32>
      %150 = arith.cmpi eq, %134, %149 : vector<8x128xi32>
      %151 = arith.andi %148, %150 : vector<8x128xi1>
      %cst_76 = arith.constant 0.000000e+00 : f32
      %152 = vector.shape_cast %131 : vector<1x1xf32> to vector<1x1xf32>
      %153 = vector.broadcast %152 : vector<1x1xf32> to vector<8x128xf32>
      %154 = vector.broadcast %cst_76 : f32 to vector<8x128xf32>
      %155 = arith.select %151, %153, %154 : vector<8x128xi1>, vector<8x128xf32>
      %156 = arith.addf %146, %155 : vector<8x128xf32>
      %c0_i32_77 = arith.constant 0 : i32
      %157 = vector.broadcast %c0_i32_77 : i32 to vector<8x128xi32>
      %158 = arith.cmpi eq, %135, %157 : vector<8x128xi32>
      %c2_i32 = arith.constant 2 : i32
      %159 = vector.broadcast %c2_i32 : i32 to vector<8x128xi32>
      %160 = arith.cmpi eq, %134, %159 : vector<8x128xi32>
      %161 = arith.andi %158, %160 : vector<8x128xi1>
      %cst_78 = arith.constant 0.000000e+00 : f32
      %162 = vector.shape_cast %132 : vector<1x1xf32> to vector<1x1xf32>
      %163 = vector.broadcast %162 : vector<1x1xf32> to vector<8x128xf32>
      %164 = vector.broadcast %cst_78 : f32 to vector<8x128xf32>
      %165 = arith.select %161, %163, %164 : vector<8x128xi1>, vector<8x128xf32>
      %166 = arith.addf %156, %165 : vector<8x128xf32>
      %c0_i32_79 = arith.constant 0 : i32
      %167 = vector.broadcast %c0_i32_79 : i32 to vector<8x128xi32>
      %168 = arith.cmpi eq, %135, %167 : vector<8x128xi32>
      %c3_i32 = arith.constant 3 : i32
      %169 = vector.broadcast %c3_i32 : i32 to vector<8x128xi32>
      %170 = arith.cmpi eq, %134, %169 : vector<8x128xi32>
      %171 = arith.andi %168, %170 : vector<8x128xi1>
      %cst_80 = arith.constant 0.000000e+00 : f32
      %172 = vector.shape_cast %133 : vector<1x1xf32> to vector<1x1xf32>
      %173 = vector.broadcast %172 : vector<1x1xf32> to vector<8x128xf32>
      %174 = vector.broadcast %cst_80 : f32 to vector<8x128xf32>
      %175 = arith.select %171, %173, %174 : vector<8x128xi1>, vector<8x128xf32>
      %176 = arith.addf %166, %175 : vector<8x128xf32>
      %177 = vector.shape_cast %176 : vector<8x128xf32> to vector<1x8x128xf32>
      %c0_81 = arith.constant 0 : index
      %c0_82 = arith.constant 0 : index
      %c0_83 = arith.constant 0 : index
      %178 = vector.load %arg5[%c0_81, %c0_82, %c0_83] : memref<1x8x128xf32, #tpu.memory_space<vmem>>, vector<1x8x128xf32>
      tpu.vector_store %arg5[%c0_81, %c0_82, %c0_83], %177 {strides = array<i32>} : memref<1x8x128xf32, #tpu.memory_space<vmem>>, vector<1x8x128xf32>,
    } else {
    }
    return
  }
  func.func @transform_0(%arg0: i32, %arg1: i32) -> (i32, i32) {
    %c1_i32 = arith.constant 1 : i32
    %0 = arith.muli %arg0, %c1_i32 : i32
    %1 = arith.addi %0, %arg1 : i32
    %c0_i32 = arith.constant 0 : i32
    %2 = arith.minsi %1, %c0_i32 : i32
    %c0_i32_0 = arith.constant 0 : i32
    %c0_i32_1 = arith.constant 0 : i32
    return %2, %c0_i32_0 : i32, i32
  }
  func.func @transform_1(%arg0: i32, %arg1: i32) -> (i32, i32) {
    %c1_i32 = arith.constant 1 : i32
    %0 = arith.muli %arg0, %c1_i32 : i32
    %1 = arith.addi %0, %arg1 : i32
    %c0_i32 = arith.constant 0 : i32
    %2 = arith.minsi %1, %c0_i32 : i32
    %c0_i32_0 = arith.constant 0 : i32
    %c0_i32_1 = arith.constant 0 : i32
    return %2, %c0_i32_0 : i32, i32
  }
  func.func @transform_2(%arg0: i32, %arg1: i32) -> (i32, i32, i32) {
    %c1_i32 = arith.constant 1 : i32
    %0 = arith.muli %arg0, %c1_i32 : i32
    %1 = arith.addi %0, %arg1 : i32
    %c0_i32 = arith.constant 0 : i32
    %2 = arith.minsi %1, %c0_i32 : i32
    %c0_i32_0 = arith.constant 0 : i32
    %c0_i32_1 = arith.constant 0 : i32
    %c0_i32_2 = arith.constant 0 : i32
    return %c0_i32_0, %2, %c0_i32_1 : i32, i32, i32
  }
  func.func @transform_3(%arg0: i32, %arg1: i32) -> (i32, i32, i32) {
    %c0_i32 = arith.constant 0 : i32
    %c0_i32_0 = arith.constant 0 : i32
    %c0_i32_1 = arith.constant 0 : i32
    return %arg0, %c0_i32, %c0_i32_0 : i32, i32, i32
  }
}

</mosaic_0001>

<bundles_post_ra>
// kernel: tpu_custom_call.1
= control target key start
LH: loop header
LB: loop body
LE: loop exit
PB: predicated region body
PF: predicated region fallthrough
CT: control target
= control target key end

     0   :  { %8 = vsyncpa [#allocation7], 0  ;;  %s487_s0 = inlined_call_operand.hbm [shape: f32[8,32], index: 0, kind: input, shape index: {}]   ;;  %s488_s1 = inlined_call_operand.hbm [shape: f32[8,32], index: 1, kind: input, shape index: {}]   ;;  %s489_s2 = inlined_call_operand.hbm [shape: f32[4,8,16], index: 2, kind: input, shape index: {}]   ;;  %s490_s3 = inlined_call_operand.hbm [shape: f32[1,8,128], index: 3, kind: output, shape index: {}]  }
   0x1   :  { %9 = vsyncpa [#allocation10], 0 }
   0x2   :  { %10 = vsyncpa [#allocation8], 0  ;;  %s430_s12 = smov [#allocation9]   ;;  %s431_s14 = smov [#allocation6]  }
   0x3   :  { %s37_s13 = sshll.u32 %s430_s12, 4  ;;  %s22_s15 = sshll.u32 %s431_s14, 4  ;;  %s38_s13 = int_to_ptr.vmem [resolvable:$true] %s37_s13  ;;  %s23_s15 = int_to_ptr.vmem [resolvable:$true] %s22_s15 }
   0x4   :  { %s352_s16 = scalar_lea.vmem %s38_s13, 128  ;;  %p357_p1 = scmp.lt.s32.totalorder %s38_s13, %s38_s13 }
   0x5   :  { %p353_p0 = scmp.ne.s32.totalorder %s38_s13, %s352_s16  ;;  %p358_p2 = scmp.lt.s32.totalorder %s352_s16, %s352_s16 }
   0x7   :  { %p359_p3 = por %p358_p2, %p357_p1 }
   0x9   :  { %p360_p4 = pnand %p359_p3, %p353_p0 }
   0xb   :  { %363 = shalt.err (!%p360_p4)
}
   0xc   :  { %40 = dma.hbm_to_vmem [thread:$0]  %s488_s1, 128, %s38_s13, [#allocation10]  }
   0xd   :  { %s372_s19 = scalar_lea.vmem %s23_s15, 128  ;;  %p377_p6 = scmp.lt.s32.totalorder %s23_s15, %s23_s15 }
   0xe   :  { %p373_p5 = scmp.ne.s32.totalorder %s23_s15, %s372_s19  ;;  %p378_p7 = scmp.lt.s32.totalorder %s372_s19, %s372_s19 }
  0x10   :  { %p379_p8 = por %p378_p7, %p377_p6 }
  0x12   :  { %p380_p9 = pnand %p379_p8, %p373_p5 }
  0x14   :  { %383 = shalt.err (!%p380_p9)
}
  0x15   :  { %25 = dma.hbm_to_vmem [thread:$0]  %s487_s0, 128, %s23_s15, [#allocation7]  }
  0x16   :  { %s432_s22 = smov [#allocation11]  }
  0x17   :  { %s51_s23 = sshll.u32 %s432_s22, 4  ;;  %s52_s23 = int_to_ptr.vmem [resolvable:$true] %s51_s23 }
  0x18   :  { %s392_s24 = scalar_lea.vmem %s52_s23, 512  ;;  %p397_p11 = scmp.lt.s32.totalorder %s52_s23, %s52_s23 }
  0x19   :  { %p393_p10 = scmp.ne.s32.totalorder %s52_s23, %s392_s24  ;;  %p398_p12 = scmp.lt.s32.totalorder %s392_s24, %s392_s24 }
  0x1b   :  { %p399_p13 = por %p398_p12, %p397_p11 }
  0x1d   :  { %p400_p0 = pnand %p399_p13, %p393_p10 }
  0x1f   :  { %403 = shalt.err (!%p400_p0)
}
  0x20   :  { %s433_s1 = smov 128   ;;  %s434_s25 = smov 8  }
  0x21   :  { %57 = dma.hbm_to_vmem [thread:$0]  %s489_s2, 512, %s52_s23, [#allocation10], %s433_s1, %s433_s1, %s434_s25  }
  0x22   :  { %424 = dma.done.wait [#allocation7], 128  }
  0x23   :  { %425 = vsyncadd [#allocation7], 4294967168 }
  0x24   :  { %426 = dma.done.wait [#allocation10], 640  }
  0x25   :  { %427 = vsyncadd [#allocation10], 4294966656  ;;  %v156_v0 = vld [vmem:[#allocation11 + $0x10] sm:$0xff]  ;;  %v113_v1 = vld [vmem:[#allocation11] sm:$0xff]  ;;  %vm117_vm0 = vcmask 130048   ;;  %vm100_vm1 = vcmask 261120  }
  0x26   :  { %v184_v2 = vld [vmem:[#allocation11 + $0x18] sm:$0xff]  ;;  %v328_v3 = vadd.f32 -0.5, %v156_v0  ;;  %v326_v4 = vadd.f32 -0.5, %v113_v1  ;;  %v128_v6 = vld [vmem:[#allocation11 + $0x8] sm:$0xff]  ;;  %v92_v7 = vld [vmem:[#allocation6] sm:$0xff]  ;;  %vm80_vm2 = vcmask 0  }
  0x27   :  { %v329_v5 = vadd.f32 -0.5, %v184_v2  ;;  %v93_v8 = vld [vmem:[#allocation9] sm:$0xff]  ;;  %v327_v9 = vadd.f32 -0.5, %v128_v6  ;;  %v435_v36 = vmov 0.0   ;;  %v436_v37 = vmov 0   ;;  %s437_s0 = smov [#allocation12]  }
  0x28   :  { %v94_v10 = vsub.f32 %v92_v7, %v93_v8  ;;  %v160_v11 = vmul.f32 %v328_v3, %v328_v3  ;;  %v116_v12 = vmul.f32 %v326_v4, %v326_v4  ;;  %81 = vst.msk [vmem:[#allocation2] sm:$0x1] %vm80_vm2, %v435_v36  ;;  %82 = vst.msk [vmem:[#allocation3] sm:$0x1] %vm80_vm2, %v435_v36  ;;  %342 = vset.pattern.permute.xlu0 %v436_v37  ;;  %s310_s2 = sshll.u32 %s437_s0, 4  ;;  %s311_s2 = int_to_ptr.vmem [resolvable:$true] %s310_s2 }
  0x29   :  { %v188_v13 = vmul.f32 %v329_v5, %v329_v5  ;;  %v132_v14 = vmul.f32 %v327_v9, %v327_v9  ;;  %v143_v15 = vsub.f32 %v327_v9, %v326_v4  ;;  %v131_v16 = vadd.f32 %v327_v9, %v326_v4  ;;  %83 = vst.msk [vmem:[#allocation4] sm:$0x1] %vm80_vm2, %v435_v36  ;;  %s404_s28 = scalar_lea.vmem %s311_s2, 128  ;;  %p409_p2 = scmp.lt.s32.totalorder %s311_s2, %s311_s2 }
  0x2a   :  { %v161_v17 = vsel %vm117_vm0, %v160_v11, 0.0  ;;  %v118_v18 = vsel %vm117_vm0, %v116_v12, 0.0  ;;  %v99_v19 = vmul.f32 %v94_v10, %v94_v10  ;;  %v171_v24 = vsub.f32 %v328_v3, %v327_v9  ;;  %84 = vst.msk [vmem:[#allocation5] sm:$0x1] %vm80_vm2, %v435_v36  ;;  %343 = vset.pattern.permute.xlu1 %v436_v37  ;;  %p405_p1 = scmp.ne.s32.totalorder %s311_s2, %s404_s28  ;;  %p410_p3 = scmp.lt.s32.totalorder %s404_s28, %s404_s28 }
  0x2b   :  { %162 = vadd.xlane.f32.xlu1 %v161_v17  ;;  %119 = vadd.xlane.f32.xlu0 %v118_v18  ;;  %v159_v20 = vadd.f32 %v328_v3, %v131_v16  ;;  %v189_v21 = vsel %vm117_vm0, %v188_v13, 0.0  ;;  %v133_v22 = vsel %vm117_vm0, %v132_v14, 0.0  ;;  %v144_v23 = vmul.f32 %v143_v15, %v143_v15 }
  0x2c   :  { %v199_v26 = vsub.f32 %v329_v5, %v328_v3  ;;  %v101_v28 = vsel %vm100_vm1, %v99_v19, 0.0  ;;  %v172_v30 = vmul.f32 %v171_v24, %v171_v24  ;;  %p411_p4 = por %p410_p3, %p409_p2 }
  0x2d   :  { %v187_v25 = vadd.f32 %v329_v5, %v159_v20  ;;  %v145_v27 = vsel %vm117_vm0, %v144_v23, 0.0 }
  0x2e   :  { %v173_v32 = vsel %vm117_vm0, %v172_v30, 0.0  ;;  %v200_v33 = vmul.f32 %v199_v26, %v199_v26  ;;  %p412_p5 = pnand %p411_p4, %p405_p1 }
  0x2f   :  { %190 = vadd.xlane.f32.xlu1 %v189_v21  ;;  %134 = vadd.xlane.f32.xlu0 %v133_v22  ;;  %v224_v29 = vmul.f32 %v187_v25, %v187_v25  ;;  %v212_v34 = vsel %vm117_vm0, %v187_v25, 0.0  ;;  %v98_v25 = vld [vmem:[#allocation2] sm:$0x1] }
  0x30   :  { %v201_v35 = vsel %vm117_vm0, %v200_v33, 0.0 }
  0x31   :  { %v225_v31 = vsel %vm117_vm0, %v224_v29, 0.0 }
  0x33   :  { %146 = vadd.xlane.f32.xlu0 %v145_v27  ;;  %102 = vadd.xlane.f32.xlu1 %v101_v28 }
  0x37   :  { %226 = vadd.xlane.f32.xlu0 %v225_v31  ;;  %174 = vadd.xlane.f32.xlu1 %v173_v32 }
  0x3b   :  { %213 = vadd.xlane.f32.xlu0 %v212_v34  ;;  %202 = vadd.xlane.f32.xlu1 %v201_v35 }
  0xb4   :  { %v163_v38 = vpop.xlane.xlu1 %162  ;;  %v120_v39 = vpop.xlane.xlu0 %119 }
  0xb5   :  { %v164_v40 = vrot.slane %v163_v38, 4  ;;  %v121_v41 = vrot.slane %v120_v39, 4 }
  0xb7   :  { %v165_v42 = vadd.f32 %v164_v40, %v163_v38  ;;  %v122_v43 = vadd.f32 %v121_v41, %v120_v39 }
  0xb8   :  { %v191_v44 = vpop.xlane.xlu1 %190  ;;  %v135_v45 = vpop.xlane.xlu0 %134 }
  0xb9   :  { %v123_v46 = vrot.slane %v122_v43, 2  ;;  %v192_v47 = vrot.slane %v191_v44, 4  ;;  %v136_v48 = vrot.slane %v135_v45, 4  ;;  %v166_v49 = vrot.slane %v165_v42, 2 }
  0xbb   :  { %v124_v50 = vadd.f32 %v123_v46, %v122_v43  ;;  %v193_v51 = vadd.f32 %v192_v47, %v191_v44  ;;  %v137_v52 = vadd.f32 %v136_v48, %v135_v45  ;;  %v167_v56 = vadd.f32 %v166_v49, %v165_v42  ;;  %v223_v47 = vld [vmem:[#allocation4] sm:$0x1]  ;;  %v211_v48 = vld [vmem:[#allocation3] sm:$0x1] }
  0xbc   :  { %v147_v53 = vpop.xlane.xlu0 %146  ;;  %v103_v54 = vpop.xlane.xlu1 %102 }
  0xbd   :  { %v138_v55 = vrot.slane %v137_v52, 2  ;;  %v125_v57 = vrot.slane %v124_v50, 1  ;;  %v148_v58 = vrot.slane %v147_v53, 4  ;;  %v104_v59 = vrot.slane %v103_v54, 4 }
  0xbe   :  { %v194_v60 = vrot.slane %v193_v51, 2  ;;  %v168_v5 = vrot.slane %v167_v56, 1 }
  0xbf   :  { %v139_v61 = vadd.f32 %v138_v55, %v137_v52  ;;  %v149_v62 = vadd.f32 %v148_v58, %v147_v53  ;;  %v105_v63 = vadd.f32 %v104_v59, %v103_v54  ;;  %v126_v6 = vadd.f32 %v125_v57, %v124_v50 }
  0xc0   :  { %v227_v0 = vpop.xlane.xlu0 %226  ;;  %v175_v1 = vpop.xlane.xlu1 %174  ;;  %v195_v9 = vadd.f32 %v194_v60, %v193_v51  ;;  %v169_v20 = vadd.f32 %v168_v5, %v167_v56  ;;  %v238_v56 = vld [vmem:[#allocation5] sm:$0x1] }
  0xc1   :  { %v140_v2 = vrot.slane %v139_v61, 1  ;;  %v228_v3 = vrot.slane %v227_v0, 4  ;;  %v176_v4 = vrot.slane %v175_v1, 4  ;;  %v150_v7 = vrot.slane %v149_v62, 2 }
  0xc2   :  { %v106_v8 = vrot.slane %v105_v63, 2  ;;  %v196_v24 = vrot.slane %v195_v9, 1 }
  0xc3   :  { %v141_v10 = vadd.f32 %v140_v2, %v139_v61  ;;  %v229_v11 = vadd.f32 %v228_v3, %v227_v0  ;;  %v177_v12 = vadd.f32 %v176_v4, %v175_v1  ;;  %v151_v21 = vadd.f32 %v150_v7, %v149_v62 }
  0xc4   :  { %v107_v13 = vadd.f32 %v106_v8, %v105_v63  ;;  %v214_v14 = vpop.xlane.xlu0 %213  ;;  %v203_v15 = vpop.xlane.xlu1 %202  ;;  %v197_v38 = vadd.f32 %v196_v24, %v195_v9  ;;  %v87_v63 = vlaneseq }
  0xc5   :  { %v142_v16 = vadd.f32 %v141_v10, %v126_v6  ;;  %v230_v17 = vrot.slane %v229_v11, 2  ;;  %v178_v18 = vrot.slane %v177_v12, 2  ;;  %v215_v19 = vrot.slane %v214_v14, 4 }
  0xc6   :  { %v108_v22 = vrot.slane %v107_v13, 1  ;;  %v204_v23 = vrot.slane %v203_v15, 4  ;;  %v152_v35 = vrot.slane %v151_v21, 1  ;;  %v88_v0 = vshrl.u32 %v87_v63, 7 }
  0xc7   :  { %v231_v26 = vadd.f32 %v230_v17, %v229_v11  ;;  %v179_v27 = vadd.f32 %v178_v18, %v177_v12  ;;  %v216_v28 = vadd.f32 %v215_v19, %v214_v14  ;;  %v170_v31 = vadd.f32 %v169_v20, %v142_v16 }
  0xc8   :  { %v109_v29 = vadd.f32 %v108_v22, %v107_v13  ;;  %v205_v30 = vadd.f32 %v204_v23, %v203_v15  ;;  %v153_v46 = vadd.f32 %v152_v35, %v151_v21  ;;  %v249_v1 = vand.u32 127, %v87_v63 }
  0xc9   :  { %v232_v32 = vrot.slane %v231_v26, 1  ;;  %v180_v33 = vrot.slane %v179_v27, 1  ;;  %v217_v34 = vrot.slane %v216_v28, 2  ;;  %v198_v43 = vadd.f32 %v197_v38, %v170_v31 }
  0xca   :  { %v110_v36 = vadd.f32 %v109_v29, %v98_v25  ;;  %v206_v37 = vrot.slane %v205_v30, 2  ;;  %vm264_vm3 = vcmp.eq.s32.totalorder %v249_v1, 1  ;;  %vm250_vm4 = vcmp.eq.s32.totalorder %v88_v0, 0 }
  0xcb   :  { %v233_v39 = vadd.f32 %v232_v32, %v231_v26  ;;  %v218_v40 = vadd.f32 %v217_v34, %v216_v28  ;;  %v181_v41 = vadd.f32 %v180_v33, %v179_v27  ;;  %vm251_vm5 = vcmp.eq.s32.totalorder %v249_v1, 0  ;;  %vm265_vm7 = vmand %vm250_vm4, %vm264_vm3 }
  0xcc   :  { %112 = vst.msk [vmem:[#allocation2] sm:$0x1] %vm80_vm2, %v110_v36  ;;  %v207_v42 = vadd.f32 %v206_v37, %v205_v30  ;;  %vm277_vm6 = vcmp.eq.s32.totalorder %v249_v1, 2  ;;  %vm252_vm8 = vmand %vm250_vm4, %vm251_vm5  ;;  %vm290_vm10 = vcmp.eq.s32.totalorder %v249_v1, 3 }
  0xcd   :  { %v234_v44 = vmul.f32 0.25, %v233_v39  ;;  %v219_v45 = vrot.slane %v218_v40, 1  ;;  %v182_v52 = vadd.f32 %v181_v41, %v153_v46  ;;  %vm278_vm9 = vmand %vm250_vm4, %vm277_vm6 }
  0xce   :  { %v208_v49 = vrot.slane %v207_v42, 1  ;;  %vm291_vm11 = vmand %vm250_vm4, %vm290_vm10 }
  0xcf   :  { %v235_v50 = vsub.f32 %v198_v43, %v234_v44  ;;  %v220_v51 = vadd.f32 %v219_v45, %v218_v40 }
  0xd0   :  { %v209_v53 = vadd.f32 %v208_v49, %v207_v42 }
  0xd1   :  { %v236_v54 = vadd.f32 %v235_v50, %v223_v47  ;;  %v221_v55 = vadd.f32 %v220_v51, %v211_v48 }
  0xd2   :  { %v210_v57 = vadd.f32 %v209_v53, %v182_v52 }
  0xd3   :  { %237 = vst.msk [vmem:[#allocation4] sm:$0x1] %vm80_vm2, %v236_v54  ;;  %222 = vst.msk [vmem:[#allocation3] sm:$0x1] %vm80_vm2, %v221_v55  ;;  %v330_v58 = vld [vmem:[#allocation2] ss:$0 sm:$0xff] }
  0xd4   :  { %v239_v59 = vadd.f32 %v238_v56, %v210_v57  ;;  %259 = vperm.xlu0 %342, %v330_v58  }
  0xd6   :  { %240 = vst.msk [vmem:[#allocation5] sm:$0x1] %vm80_vm2, %v239_v59 }
  0xda   :  { %v331_v60 = vld [vmem:[#allocation3] ss:$0 sm:$0xff]  ;;  %v332_v61 = vld [vmem:[#allocation4] ss:$0 sm:$0xff] }
  0xdb   :  { %272 = vperm.xlu1 %343, %v331_v60  }
  0xdd   :  { %v333_v62 = vld [vmem:[#allocation5] ss:$0 sm:$0xff] }
  0xdf   :  { %285 = vperm.xlu1 %343, %v332_v61  }
  0xe3   :  { %298 = vperm.xlu1 %343, %v333_v62  }
 0x14f   :  { %v260_v3 = vpop.permute.xlu0 %259 }
 0x150   :  { %v262_v6 = vsel %vm252_vm8, %v260_v3, 0.0 }
 0x156   :  { %v273_v2 = vpop.permute.xlu1 %272 }
 0x157   :  { %v275_v4 = vsel %vm265_vm7, %v273_v2, 0.0 }
 0x158   :  { %v276_v8 = vadd.f32 %v275_v4, %v262_v6 }
 0x15a   :  { %v286_v5 = vpop.permute.xlu1 %285 }
 0x15b   :  { %v288_v7 = vsel %vm278_vm9, %v286_v5, 0.0 }
 0x15c   :  { %v289_v9 = vadd.f32 %v288_v7, %v276_v8 }
 0x15e   :  { %v299_v10 = vpop.permute.xlu1 %298 }
 0x15f   :  { %v301_v11 = vsel %vm291_vm11, %v299_v10, 0.0 }
 0x160   :  { %v302_v12 = vadd.f32 %v301_v11, %v289_v9 }
 0x162   :  { %303 = vst [vmem:[#allocation12] sm:$0xff] %v302_v12 }
 0x163   :  { %415 = shalt.err (!%p412_p5)
}
 0x164   :  { %313 = dma.vmem_to_hbm [thread:$0]  %s311_s2, 128, %s490_s3, [#allocation8]  }
 0x165   :  { %428 = dma.done.wait [#allocation8], 128  }
 0x166   :  { %429 = vsyncadd [#allocation8], 4294967168 }
 0x167   :  { %317 = vsyncpa [#allocation7], 1 }
 0x168   :  { %318 = vsyncpa [#allocation10], 1 }
 0x169   :  { %319 = vsyncpa [#allocation8], 1 }

</bundles_post_ra>
